<compile_context>
chip_gen: v7x
topology: tpu7x:2x2x1
jax: 0.10.0
libtpu: 0.0.40
codegen_flags: <defaults>
</compile_context>

<pallas_src>
import functools

import jax
import jax.numpy as jnp
from jax import lax
from jax.experimental import pallas as pl
from jax.experimental.pallas import tpu as pltpu


def _round_up(a, m):
    return -(-a // m) * m


@functools.lru_cache(maxsize=None)
def _tpu_config():
    """Return (vmem_limit_bytes, is_megacore) for the current TPU generation.

    v5e/v6e: 128 MiB physical VMEM, 1 TensorCore  -> big budget, no grid split.
    v7x:      64 MiB physical VMEM, 2 TensorCores -> conservative budget and
              >= 2 balanced grid steps so both cores get work.
    """
    kind = ""
    try:
        kind = jax.devices()[0].device_kind.lower()
    except Exception:
        pass
    vmem_phys = None
    try:
        vmem_phys = int(pltpu.get_tpu_info().vmem_capacity_bytes)
    except Exception:
        pass
    is_v7 = "7" in kind
    if vmem_phys is None:
        vmem_phys = (64 << 20) if is_v7 else (128 << 20)
    is_megacore = is_v7 or vmem_phys <= (64 << 20)
    if is_megacore:
        budget = 48 << 20                                 # 64 MiB parts (v7x)
    else:
        budget = min(96 << 20, vmem_phys * 3 // 4)        # 128 MiB parts
    return int(budget), bool(is_megacore)


# ----------------------------------------------------------------------------
# Fused single-pass kernel: pool + MLP gate + excite per batch chunk.
# ----------------------------------------------------------------------------
def _se_kernel(x_ref, w1t_ref, b1_ref, w2t_ref, b2_ref, o_ref, *, inv_hw):
    # x_ref block: (Bn, C, HW); w1t: (C, Cr); b1: (1, Cr); w2t: (Cr, C); b2: (1, C)

    # Squeeze: f32-accumulated reduction straight from the ref (no block-sized
    # f32 temp of x); fold the 1/HW scale into the tiny (Bn, C) result.
    s = jnp.sum(x_ref[...], axis=-1, dtype=jnp.float32) * inv_hw           # (Bn, C)

    # conv_reduce (1x1 conv == channel matmul) + bias.
    r = jnp.dot(s, w1t_ref[...], preferred_element_type=jnp.float32) + b1_ref[...]

    # Mish: r * tanh(softplus(r)), numerically stable softplus.
    sp = jnp.maximum(r, 0.0) + jnp.log1p(jnp.exp(-jnp.abs(r)))
    m = r * jnp.tanh(sp)                                                    # (Bn, Cr)

    # conv_expand + bias.
    e = jnp.dot(m, w2t_ref[...], preferred_element_type=jnp.float32) + b2_ref[...]

    # HSigmoid: relu6(e + 3) / 6.
    gate = jnp.clip(e + 3.0, 0.0, 6.0) * (1.0 / 6.0)                        # (Bn, C)

    # Excite: re-stream x from VMEM, scale each (image, channel) row.
    # Gate is cast to x.dtype before the multiply (keeps the store loop lean).
    o_ref[...] = (x_ref[...] * gate[:, :, None].astype(x_ref.dtype)).astype(o_ref.dtype)


def _plan_fused(n, per_img_vmem, block_budget, is_megacore):
    """Return (bn, grid_n), or None if one image (4x buffers) does not fit."""
    if 4 * per_img_vmem > block_budget:
        return None
    bn_max = max(1, block_budget // (4 * per_img_vmem))
    bn = min(n, bn_max)
    grid_n = -(-n // bn)
    if is_megacore and n > 1:
        # Feed both TensorCores: >= 2 near-equal steps (even count when possible).
        grid_n = max(2, grid_n)
        if grid_n % 2 == 1 and grid_n < n:
            grid_n += 1
        bn = -(-n // grid_n)
        grid_n = -(-n // bn)
    return int(bn), int(grid_n)


def _se_fused(x_flat, w1, b1, w2, b2, bn, grid_n, vmem_limit):
    N, C, HW = x_flat.shape
    Cr = w1.shape[0]
    w1t = w1.T                       # (C, Cr)   pre-transposed in the wrapper
    w2t = w2.T                       # (Cr, C)
    b1r = b1.reshape(1, Cr)
    b2r = b2.reshape(1, C)

    kernel = functools.partial(_se_kernel, inv_hw=1.0 / HW)
    return pl.pallas_call(
        kernel,
        out_shape=jax.ShapeDtypeStruct((N, C, HW), x_flat.dtype),
        grid_spec=pltpu.PrefetchScalarGridSpec(
            num_scalar_prefetch=0,
            grid=(grid_n,),
            in_specs=[
                pl.BlockSpec((bn, C, HW), lambda n: (n, 0, 0)),
                pl.BlockSpec((C, Cr), lambda n: (0, 0)),
                pl.BlockSpec((1, Cr), lambda n: (0, 0)),
                pl.BlockSpec((Cr, C), lambda n: (0, 0)),
                pl.BlockSpec((1, C), lambda n: (0, 0)),
            ],
            out_specs=pl.BlockSpec((bn, C, HW), lambda n: (n, 0, 0)),
        ),
        compiler_params=pltpu.CompilerParams(
            dimension_semantics=("parallel",),
            vmem_limit_bytes=vmem_limit,
        ),
    )(x_flat, w1t, b1r, w2t, b2r)


# ----------------------------------------------------------------------------
# Two-phase fallback: (1) chunked pool + gate, (2) streamed excite multiply.
# ----------------------------------------------------------------------------
def _pool_gate_kernel(x_ref, w1_ref, b1c_ref, w2_ref, b2c_ref, gate_ref, acc_ref,
                      *, hw_total, hw_chunk, inv_hw):
    # x block: (1, C, hw_chunk); w1: (Cr, C); b1c: (Cr, 1); w2: (C, Cr); b2c: (C, 1)
    # gate out block: (1, C, 1); acc scratch: (C, 1) f32.
    h = pl.program_id(1)

    @pl.when(h == 0)
    def _():
        acc_ref[...] = jnp.zeros_like(acc_ref)

    xb = x_ref[0]                                                    # (C, hw_chunk)
    # Mask padded lanes of the (possibly partial) last spatial chunk.
    lane = lax.broadcasted_iota(jnp.int32, xb.shape, 1)
    valid = (h * hw_chunk + lane) < hw_total
    xs = jnp.where(valid, xb, jnp.zeros((), xb.dtype))
    acc_ref[...] += jnp.sum(xs, axis=-1, keepdims=True, dtype=jnp.float32)   # (C, 1)

    @pl.when(h == pl.num_programs(1) - 1)
    def _():
        s = acc_ref[...] * inv_hw                                             # (C, 1)
        r = jnp.dot(w1_ref[...], s, preferred_element_type=jnp.float32) + b1c_ref[...]
        sp = jnp.maximum(r, 0.0) + jnp.log1p(jnp.exp(-jnp.abs(r)))
        m = r * jnp.tanh(sp)                                                  # (Cr, 1)
        e = jnp.dot(w2_ref[...], m, preferred_element_type=jnp.float32) + b2c_ref[...]
        gate = jnp.clip(e + 3.0, 0.0, 6.0) * (1.0 / 6.0)                      # (C, 1)
        gate_ref[...] = gate[None].astype(gate_ref.dtype)                     # (1, C, 1)


def _excite_kernel(x_ref, gate_ref, o_ref):
    # x block: (1, C, hw_chunk); gate block: (1, C, 1)
    o_ref[...] = (x_ref[...] * gate_ref[...].astype(x_ref.dtype)).astype(o_ref.dtype)


def _plan_hw_chunk(hw, c_pad, itemsize, block_budget):
    hw_pad = _round_up(hw, 128)
    # Excite phase streams in + out, each double-buffered -> 4 chunk-sized buffers.
    max_lanes = block_budget // (4 * c_pad * itemsize)
    chunk = max(128, (max_lanes // 128) * 128)
    return int(min(chunk, hw_pad))


def _se_two_phase(x_flat, w1, b1, w2, b2, hw_chunk, vmem_limit):
    N, C, HW = x_flat.shape
    Cr = w1.shape[0]
    n_hw = pl.cdiv(HW, hw_chunk)
    b1c = b1.reshape(Cr, 1)
    b2c = b2.reshape(C, 1)

    pool_kernel = functools.partial(
        _pool_gate_kernel, hw_total=HW, hw_chunk=hw_chunk, inv_hw=1.0 / HW)

    # Phase 1: per-image pooled gate, accumulated across HW chunks.
    gate = pl.pallas_call(
        pool_kernel,
        out_shape=jax.ShapeDtypeStruct((N, C, 1), jnp.float32),
        grid_spec=pltpu.PrefetchScalarGridSpec(
            num_scalar_prefetch=0,
            grid=(N, n_hw),
            in_specs=[
                pl.BlockSpec((1, C, hw_chunk), lambda n, h: (n, 0, h)),
                pl.BlockSpec((Cr, C), lambda n, h: (0, 0)),
                pl.BlockSpec((Cr, 1), lambda n, h: (0, 0)),
                pl.BlockSpec((C, Cr), lambda n, h: (0, 0)),
                pl.BlockSpec((C, 1), lambda n, h: (0, 0)),
            ],
            out_specs=pl.BlockSpec((1, C, 1), lambda n, h: (n, 0, 0)),
            scratch_shapes=[pltpu.VMEM((C, 1), jnp.float32)],
        ),
        compiler_params=pltpu.CompilerParams(
            dimension_semantics=("parallel", "arbitrary"),
            vmem_limit_bytes=vmem_limit,
        ),
    )(x_flat, w1, b1c, w2, b2c)

    # Phase 2: streamed excite multiply (second HBM pass over x).
    out_flat = pl.pallas_call(
        _excite_kernel,
        out_shape=jax.ShapeDtypeStruct((N, C, HW), x_flat.dtype),
        grid_spec=pltpu.PrefetchScalarGridSpec(
            num_scalar_prefetch=0,
            grid=(N, n_hw),
            in_specs=[
                pl.BlockSpec((1, C, hw_chunk), lambda n, h: (n, 0, h)),
                pl.BlockSpec((1, C, 1), lambda n, h: (n, 0, 0)),
            ],
            out_specs=pl.BlockSpec((1, C, hw_chunk), lambda n, h: (n, 0, h)),
        ),
        compiler_params=pltpu.CompilerParams(
            dimension_semantics=("parallel", "parallel"),
            vmem_limit_bytes=vmem_limit,
        ),
    )(x_flat, gate)
    return out_flat


# ----------------------------------------------------------------------------
# Public wrapper.
# ----------------------------------------------------------------------------
@functools.partial(jax.jit, static_argnames=("force_two_phase", "hw_chunk"))
def squeeze_excite(x, w1, b1, w2, b2, force_two_phase=False, hw_chunk=None):
    """x: (N, C, H, W); w1: (Cr, C); b1: (Cr,); w2: (C, Cr); b2: (C,)."""
    N, C, H, W = x.shape
    HW = H * W
    itemsize = jnp.dtype(x.dtype).itemsize

    vmem_limit, is_megacore = _tpu_config()
    block_budget = vmem_limit - (4 << 20)      # headroom for weights / internals

    # Lane / sublane padded footprint of one image's (C, HW) tile in VMEM.
    sub = max(8, 32 // itemsize)               # 8 (f32) / 16 (bf16) / 32 (int8)
    c_pad = _round_up(C, sub)
    hw_pad = _round_up(HW, 128)
    per_img_vmem = c_pad * hw_pad * itemsize

    x_flat = x.reshape(N, C, HW)

    plan = None if force_two_phase else _plan_fused(
        N, per_img_vmem, block_budget, is_megacore)

    if plan is not None:
        bn, grid_n = plan
        out_flat = _se_fused(x_flat, w1, b1, w2, b2, bn, grid_n, vmem_limit)
    else:
        # NOTE: on v7x with N == 1 the pool phase's accumulation axis cannot be
        # sharded across the two TensorCores; acceptable for this rare path.
        if hw_chunk is None:
            chunk = _plan_hw_chunk(HW, c_pad, itemsize, block_budget)
        else:
            chunk = min(_round_up(int(hw_chunk), 128), hw_pad)
        out_flat = _se_two_phase(x_flat, w1, b1, w2, b2, chunk, vmem_limit)

    return out_flat.reshape(N, C, H, W)


def _reference(x, w1, b1, w2, b2):
    # Pure-JAX reference for sanity checking.
    s = jnp.mean(x, axis=(2, 3))                                   # (N, C)
    r = s @ w1.T + b1                                              # (N, Cr)
    m = r * jnp.tanh(jax.nn.softplus(r))
    e = m @ w2.T + b2                                              # (N, C)
    gate = jnp.clip(e + 3.0, 0.0, 6.0) / 6.0
    return x * gate[:, :, None, None]


if __name__ == "__main__":
    key = jax.random.PRNGKey(0)
    N, C, H, W = 2, 8, 16, 16
    reduction = 4
    Cr = C // reduction

    k_x, k_w1, k_b1, k_w2, k_b2 = jax.random.split(key, 5)
    x = jax.random.normal(k_x, (N, C, H, W), dtype=jnp.float32)
    # Deterministic synthetic parameters for conv_reduce / conv_expand (1x1 convs).
    w1 = 0.1 * jax.random.normal(k_w1, (Cr, C), dtype=jnp.float32)
    b1 = 0.1 * jax.random.normal(k_b1, (Cr,), dtype=jnp.float32)
    w2 = 0.1 * jax.random.normal(k_w2, (C, Cr), dtype=jnp.float32)
    b2 = 0.1 * jax.random.normal(k_b2, (C,), dtype=jnp.float32)

    # Main fused path.
    out = jax.block_until_ready(squeeze_excite(x, w1, b1, w2, b2))
    ref = _reference(x, w1, b1, w2, b2)
    assert out.shape == (N, C, H, W)
    assert jnp.allclose(out, ref, atol=1e-5, rtol=1e-5), "fused path mismatch"

    # Exercise the two-phase (spatially chunked) fallback, including a partial
    # last chunk (12*12 = 144 -> chunks of 128 + 16 valid lanes).
    x2 = jax.random.normal(k_x, (N, C, 12, 12), dtype=jnp.float32)
    out2 = jax.block_until_ready(
        squeeze_excite(x2, w1, b1, w2, b2, force_two_phase=True, hw_chunk=128))
    ref2 = _reference(x2, w1, b1, w2, b2)
    assert jnp.allclose(out2, ref2, atol=1e-5, rtol=1e-5), "two-phase path mismatch"

    print("KERNEL_OK")
</pallas_src>

<mosaic_0001>
module attributes {stable_mosaic.version = 11 : i64} {
  func.func @_se_kernel(%arg0: i32, %arg1: memref<2x8x256xf32, #tpu.memory_space<vmem>>, %arg2: memref<8x2xf32, #tpu.memory_space<vmem>>, %arg3: memref<1x2xf32, #tpu.memory_space<vmem>>, %arg4: memref<2x8xf32, #tpu.memory_space<vmem>>, %arg5: memref<1x8xf32, #tpu.memory_space<vmem>>, %arg6: memref<2x8x256xf32, #tpu.memory_space<vmem>>) attributes {dimension_semantics = [#tpu.dimension_semantics<parallel>], iteration_bounds = array<i64: 1>, scalar_prefetch = 0 : i64, scratch_operands = 0 : i64, tpu.core_type = #tpu.core_type<tc>, window_params = [{transform_indices = @transform_0, window_bounds = array<i64: 2, 8, 256>}, {pipeline_mode = #tpu.pipeline_mode<synchronous>, transform_indices = @transform_1, window_bounds = array<i64: 8, 2>}, {pipeline_mode = #tpu.pipeline_mode<synchronous>, transform_indices = @transform_2, window_bounds = array<i64: 1, 2>}, {pipeline_mode = #tpu.pipeline_mode<synchronous>, transform_indices = @transform_3, window_bounds = array<i64: 2, 8>}, {pipeline_mode = #tpu.pipeline_mode<synchronous>, transform_indices = @transform_4, window_bounds = array<i64: 1, 8>}, {transform_indices = @transform_5, window_bounds = array<i64: 2, 8, 256>}]} {
    %c0 = arith.constant 0 : index
    %c0_0 = arith.constant 0 : index
    %c0_1 = arith.constant 0 : index
    %0 = vector.load %arg1[%c0, %c0_0, %c0_1] : memref<2x8x256xf32, #tpu.memory_space<vmem>>, vector<2x8x256xf32>
    %cst = arith.constant dense<0.000000e+00> : vector<2x8xf32>
    %1 = vector.multi_reduction <add>, %0, %cst [2] : vector<2x8x256xf32> to vector<2x8xf32>
    %cst_2 = arith.constant 3.906250e-03 : f32
    %2 = vector.broadcast %cst_2 : f32 to vector<2x8xf32>
    %3 = arith.mulf %1, %2 : vector<2x8xf32>
    %c0_3 = arith.constant 0 : index
    %c0_4 = arith.constant 0 : index
    %4 = vector.load %arg2[%c0_3, %c0_4] : memref<8x2xf32, #tpu.memory_space<vmem>>, vector<8x2xf32>
    %cst_5 = arith.constant dense<0.000000e+00> : vector<2x2xf32>
    %5 = tpu.matmul %3, %4, %cst_5 {dimension_numbers = #tpu.dot_dimension_numbers<[1], [0], [0], [1], [0, 0, 1, 1], [], []>} : vector<2x8xf32>, vector<8x2xf32>, vector<2x2xf32> -> vector<2x2xf32>
    %c0_6 = arith.constant 0 : index
    %c0_7 = arith.constant 0 : index
    %6 = vector.load %arg3[%c0_6, %c0_7] : memref<1x2xf32, #tpu.memory_space<vmem>>, vector<1x2xf32>
    %7 = vector.broadcast %6 : vector<1x2xf32> to vector<2x2xf32>
    %8 = arith.addf %5, %7 : vector<2x2xf32>
    %cst_8 = arith.constant 0.000000e+00 : f32
    %9 = vector.broadcast %cst_8 : f32 to vector<2x2xf32>
    %10 = arith.maximumf %8, %9 : vector<2x2xf32>
    %11 = math.absf %8 : vector<2x2xf32>
    %cst_9 = arith.constant 0.000000e+00 : f32
    %12 = vector.broadcast %cst_9 : f32 to vector<2x2xf32>
    %13 = arith.subf %12, %11 : vector<2x2xf32>
    %14 = math.exp %13 : vector<2x2xf32>
    %15 = math.log1p %14 : vector<2x2xf32>
    %16 = arith.addf %10, %15 : vector<2x2xf32>
    %17 = math.tanh %16 : vector<2x2xf32>
    %18 = arith.mulf %8, %17 : vector<2x2xf32>
    %c0_10 = arith.constant 0 : index
    %c0_11 = arith.constant 0 : index
    %19 = vector.load %arg4[%c0_10, %c0_11] : memref<2x8xf32, #tpu.memory_space<vmem>>, vector<2x8xf32>
    %cst_12 = arith.constant dense<0.000000e+00> : vector<2x8xf32>
    %20 = tpu.matmul %18, %19, %cst_12 {dimension_numbers = #tpu.dot_dimension_numbers<[1], [0], [0], [1], [0, 0, 1, 1], [], []>} : vector<2x2xf32>, vector<2x8xf32>, vector<2x8xf32> -> vector<2x8xf32>
    %c0_13 = arith.constant 0 : index
    %c0_14 = arith.constant 0 : index
    %21 = vector.load %arg5[%c0_13, %c0_14] : memref<1x8xf32, #tpu.memory_space<vmem>>, vector<1x8xf32>
    %22 = vector.broadcast %21 : vector<1x8xf32> to vector<2x8xf32>
    %23 = arith.addf %20, %22 : vector<2x8xf32>
    %cst_15 = arith.constant 3.000000e+00 : f32
    %24 = vector.broadcast %cst_15 : f32 to vector<2x8xf32>
    %25 = arith.addf %23, %24 : vector<2x8xf32>
    %cst_16 = arith.constant 0.000000e+00 : f32
    %cst_17 = arith.constant 6.000000e+00 : f32
    %26 = vector.broadcast %cst_16 : f32 to vector<2x8xf32>
    %27 = arith.maximumf %26, %25 : vector<2x8xf32>
    %28 = vector.broadcast %cst_17 : f32 to vector<2x8xf32>
    %29 = arith.minimumf %28, %27 : vector<2x8xf32>
    %cst_18 = arith.constant 0.166666672 : f32
    %30 = vector.broadcast %cst_18 : f32 to vector<2x8xf32>
    %31 = arith.mulf %29, %30 : vector<2x8xf32>
    %c0_19 = arith.constant 0 : index
    %c0_20 = arith.constant 0 : index
    %c0_21 = arith.constant 0 : index
    %32 = vector.load %arg1[%c0_19, %c0_20, %c0_21] : memref<2x8x256xf32, #tpu.memory_space<vmem>>, vector<2x8x256xf32>
    %33 = vector.shape_cast %31 : vector<2x8xf32> to vector<2x8x1xf32>
    %34 = vector.broadcast %33 : vector<2x8x1xf32> to vector<2x8x256xf32>
    %35 = arith.mulf %32, %34 : vector<2x8x256xf32>
    %c0_22 = arith.constant 0 : index
    %c0_23 = arith.constant 0 : index
    %c0_24 = arith.constant 0 : index
    %36 = vector.load %arg6[%c0_22, %c0_23, %c0_24] : memref<2x8x256xf32, #tpu.memory_space<vmem>>, vector<2x8x256xf32>
    tpu.vector_store %arg6[%c0_22, %c0_23, %c0_24], %35 {strides = array<i32>} : memref<2x8x256xf32, #tpu.memory_space<vmem>>, vector<2x8x256xf32>,
    return
  }
  func.func @transform_0(%arg0: i32) -> (i32, i32, i32) {
    %c0_i32 = arith.constant 0 : i32
    %c0_i32_0 = arith.constant 0 : i32
    %c0_i32_1 = arith.constant 0 : i32
    return %arg0, %c0_i32, %c0_i32_0 : i32, i32, i32
  }
  func.func @transform_1(%arg0: i32) -> (i32, i32) {
    %c0_i32 = arith.constant 0 : i32
    %c0_i32_0 = arith.constant 0 : i32
    %c0_i32_1 = arith.constant 0 : i32
    return %c0_i32, %c0_i32_0 : i32, i32
  }
  func.func @transform_2(%arg0: i32) -> (i32, i32) {
    %c0_i32 = arith.constant 0 : i32
    %c0_i32_0 = arith.constant 0 : i32
    %c0_i32_1 = arith.constant 0 : i32
    return %c0_i32, %c0_i32_0 : i32, i32
  }
  func.func @transform_3(%arg0: i32) -> (i32, i32) {
    %c0_i32 = arith.constant 0 : i32
    %c0_i32_0 = arith.constant 0 : i32
    %c0_i32_1 = arith.constant 0 : i32
    return %c0_i32, %c0_i32_0 : i32, i32
  }
  func.func @transform_4(%arg0: i32) -> (i32, i32) {
    %c0_i32 = arith.constant 0 : i32
    %c0_i32_0 = arith.constant 0 : i32
    %c0_i32_1 = arith.constant 0 : i32
    return %c0_i32, %c0_i32_0 : i32, i32
  }
  func.func @transform_5(%arg0: i32) -> (i32, i32, i32) {
    %c0_i32 = arith.constant 0 : i32
    %c0_i32_0 = arith.constant 0 : i32
    %c0_i32_1 = arith.constant 0 : i32
    return %arg0, %c0_i32, %c0_i32_0 : i32, i32, i32
  }
}

</mosaic_0001>

<bundles_post_ra>
// kernel: squeeze_excite.1
= control target key start
LH: loop header
LB: loop body
LE: loop exit
PB: predicated region body
PF: predicated region fallthrough
CT: control target
= control target key end

     0   :  { %10 = vsyncpa [#allocation3], 0  ;;  %s645_s0 = inlined_call_operand.hbm [shape: f32[2,8,256], index: 0, kind: input, shape index: {}]   ;;  %s646_s1 = inlined_call_operand.hbm [shape: f32[8,2], index: 1, kind: input, shape index: {}]   ;;  %s647_s2 = inlined_call_operand.hbm [shape: f32[1,2], index: 2, kind: input, shape index: {}]   ;;  %s648_s3 = inlined_call_operand.hbm [shape: f32[2,8], index: 3, kind: input, shape index: {}]   ;;  %s649_s4 = inlined_call_operand.hbm [shape: f32[1,8], index: 4, kind: input, shape index: {}]   ;;  %s650_s5 = inlined_call_operand.hbm [shape: f32[2,8,256], index: 5, kind: output, shape index: {}]  }
   0x1   :  { %11 = vsyncpa [#allocation6], 0 }
   0x2   :  { %12 = vsyncpa [#allocation9], 0 }
   0x3   :  { %13 = vsyncpa [#allocation4], 0  ;;  %s511_s18 = smov [#allocation5]   ;;  %s512_s20 = smov [#allocation8]  }
   0x4   :  { %s32_s19 = sshll.u32 %s511_s18, 4  ;;  %s52_s21 = sshll.u32 %s512_s20, 4  ;;  %s33_s19 = int_to_ptr.vmem [resolvable:$true] %s32_s19  ;;  %s53_s21 = int_to_ptr.vmem [resolvable:$true] %s52_s21 }
   0x5   :  { %s371_s24 = scalar_lea.hbm %s646_s1, 128 }
   0x6   :  { %p372_p0 = scmp.ne.s32.totalorder %s646_s1, %s371_s24  ;;  %p375_p1 = scmp.lt.u32.totalorder %s371_s24, %s646_s1 }
   0x8   :  { %p377_p2 = pnand %p375_p1, %p372_p0 }
   0xa   :  { %380 = shalt.err (!%p377_p2)
}
   0xb   :  { %s381_s29 = scalar_lea.vmem %s33_s19, 128  ;;  %p386_p4 = scmp.lt.s32.totalorder %s33_s19, %s33_s19 }
   0xc   :  { %p382_p3 = scmp.ne.s32.totalorder %s33_s19, %s381_s29  ;;  %p387_p5 = scmp.lt.s32.totalorder %s381_s29, %s381_s29 }
   0xe   :  { %p388_p6 = por %p387_p5, %p386_p4 }
  0x10   :  { %p389_p7 = pnand %p388_p6, %p382_p3 }
  0x12   :  { %392 = shalt.err (!%p389_p7)
}
  0x13   :  { %35 = dma.hbm_to_vmem [thread:$0]  %s646_s1, 128, %s33_s19, [#allocation6]  }
  0x14   :  { %s393_s9 = scalar_lea.hbm %s648_s3, 32 }
  0x15   :  { %p394_p8 = scmp.ne.s32.totalorder %s648_s3, %s393_s9  ;;  %p397_p9 = scmp.lt.u32.totalorder %s393_s9, %s648_s3 }
  0x17   :  { %p399_p10 = pnand %p397_p9, %p394_p8 }
  0x19   :  { %402 = shalt.err (!%p399_p10)
}
  0x1a   :  { %s403_s14 = scalar_lea.vmem %s53_s21, 32  ;;  %p408_p12 = scmp.lt.s32.totalorder %s53_s21, %s53_s21 }
  0x1b   :  { %p404_p11 = scmp.ne.s32.totalorder %s53_s21, %s403_s14  ;;  %p409_p13 = scmp.lt.s32.totalorder %s403_s14, %s403_s14 }
  0x1d   :  { %p410_p0 = por %p409_p13, %p408_p12 }
  0x1f   :  { %p411_p1 = pnand %p410_p0, %p404_p11 }
  0x21   :  { %414 = shalt.err (!%p411_p1)
}
  0x22   :  { %55 = dma.hbm_to_vmem [thread:$0]  %s648_s3, 32, %s53_s21, [#allocation9]  }
  0x23   :  { %s513_s16 = smov [#allocation2]   ;;  %s415_s20 = scalar_lea.hbm %s645_s0, 512 }
  0x24   :  { %s19_s17 = sshll.u32 %s513_s16, 4  ;;  %p416_p2 = scmp.ne.s32.totalorder %s645_s0, %s415_s20  ;;  %s20_s17 = int_to_ptr.vmem [resolvable:$true] %s19_s17 }
  0x25   :  { %p419_p3 = scmp.lt.u32.totalorder %s415_s20, %s645_s0 }
  0x27   :  { %p421_p4 = pnand %p419_p3, %p416_p2 }
  0x29   :  { %424 = shalt.err (!%p421_p4)
}
  0x2a   :  { %s425_s26 = scalar_lea.vmem %s20_s17, 512  ;;  %p430_p6 = scmp.lt.s32.totalorder %s20_s17, %s20_s17 }
  0x2b   :  { %p426_p5 = scmp.ne.s32.totalorder %s20_s17, %s425_s26  ;;  %p431_p7 = scmp.lt.s32.totalorder %s425_s26, %s425_s26 }
  0x2d   :  { %p432_p8 = por %p431_p7, %p430_p6 }
  0x2f   :  { %p433_p9 = pnand %p432_p8, %p426_p5 }
  0x31   :  { %436 = shalt.err (!%p433_p9)
}
  0x32   :  { %s514_s3 = smov 256   ;;  %s515_s21 = smov 16  }
  0x33   :  { %25 = dma.hbm_to_vmem [thread:$0]  %s645_s0, 512, %s20_s17, [#allocation3], %s514_s3, %s514_s3, %s515_s21  }
  0x34   :  { %s516_s29 = smov [#allocation7]   ;;  %s517_s6 = smov [#allocation10]  }
  0x35   :  { %s42_s30 = sshll.u32 %s516_s29, 4  ;;  %s62_s7 = sshll.u32 %s517_s6, 4  ;;  %s43_s30 = int_to_ptr.vmem [resolvable:$true] %s42_s30  ;;  %s63_s7 = int_to_ptr.vmem [resolvable:$true] %s62_s7 }
  0x36   :  { %s437_s10 = scalar_lea.hbm %s647_s2, 16 }
  0x37   :  { %p438_p10 = scmp.ne.s32.totalorder %s647_s2, %s437_s10  ;;  %p441_p11 = scmp.lt.u32.totalorder %s437_s10, %s647_s2 }
  0x39   :  { %p443_p12 = pnand %p441_p11, %p438_p10 }
  0x3b   :  { %446 = shalt.err (!%p443_p12)
}
  0x3c   :  { %s447_s0 = scalar_lea.vmem %s43_s30, 16  ;;  %s451_s1 = scalar_lea.vmem %s43_s30, 32 }
  0x3d   :  { %p448_p13 = scmp.ne.s32.totalorder %s43_s30, %s447_s0  ;;  %p452_p0 = scmp.lt.s32.totalorder %s43_s30, %s43_s30 }
  0x3e   :  { %p453_p1 = scmp.lt.s32.totalorder %s451_s1, %s447_s0 }
  0x40   :  { %p454_p2 = por %p453_p1, %p452_p0 }
  0x42   :  { %p455_p3 = pnand %p454_p2, %p448_p13 }
  0x44   :  { %458 = shalt.err (!%p455_p3)
}
  0x45   :  { %45 = dma.hbm_to_vmem [thread:$0]  %s647_s2, 16, %s43_s30, [#allocation6]  }
  0x46   :  { %s459_s19 = scalar_lea.hbm %s649_s4, 16 }
  0x47   :  { %p460_p4 = scmp.ne.s32.totalorder %s649_s4, %s459_s19  ;;  %p463_p5 = scmp.lt.u32.totalorder %s459_s19, %s649_s4 }
  0x49   :  { %p465_p6 = pnand %p463_p5, %p460_p4 }
  0x4b   :  { %468 = shalt.err (!%p465_p6)
}
  0x4c   :  { %s469_s25 = scalar_lea.vmem %s63_s7, 16  ;;  %s473_s26 = scalar_lea.vmem %s63_s7, 32 }
  0x4d   :  { %p470_p7 = scmp.ne.s32.totalorder %s63_s7, %s469_s25  ;;  %p474_p8 = scmp.lt.s32.totalorder %s63_s7, %s63_s7 }
  0x4e   :  { %p475_p9 = scmp.lt.s32.totalorder %s473_s26, %s469_s25 }
  0x50   :  { %p476_p10 = por %p475_p9, %p474_p8 }
  0x52   :  { %p477_p11 = pnand %p476_p10, %p470_p7 }
  0x54   :  { %480 = shalt.err (!%p477_p11)
}
  0x55   :  { %65 = dma.hbm_to_vmem [thread:$0]  %s649_s4, 16, %s63_s7, [#allocation9]  }
  0x56   :  { %503 = dma.done.wait [#allocation3], 512  }
  0x57   :  { %504 = vsyncadd [#allocation3], 4294966784 }
  0x58   :  { %505 = dma.done.wait [#allocation6], 144  }
  0x59   :  { %506 = vsyncadd [#allocation6], 4294967152 }
  0x5a   :  { %507 = dma.done.wait [#allocation9], 48  }
  0x5b   :  { %508 = vsyncadd [#allocation9], 4294967248  ;;  %v614_v0 = vld [vmem:[#allocation2] sm:$0xff]  ;;  %v616_v1 = vld [vmem:[#allocation2 + $0x8] sm:$0xff]  ;;  %v518_v7 = vmov 0.0   ;;  %vm519_vm0 = vmmov 0   ;;  %v103_v8 = vlaneseq }
  0x5c   :  { %v618_v2 = vld [vmem:[#allocation2 + $0x10] sm:$0xff]  ;;  %v85_v3 = vadd.f32 %v616_v1, %v614_v0  ;;  %v622_v4 = vld [vmem:[#allocation2 + $0x18] sm:$0xff]  ;;  %v93_v6 = vld [vmem:[#allocation5] sm:$0xff]  ;;  %345 = vmatprep.subr.mxu0 %v518_v7  ;;  %347 = vmatprep.mubr.msk.f32.mxu0 %vm519_vm0, %v518_v7  ;;  %vm113_vm1 = vcmask 1041409   ;;  %vm115_vm2 = vcmask 64512   ;;  %vm217_vm3 = vcmask 1041408  }
  0x5d   :  { %v88_v5 = vadd.f32 %v622_v4, %v618_v2  ;;  %346 = vmatpush3.msra.mxu0 %v93_v6  ;;  %350 = vmatprep.subr.mxu1 %v518_v7  ;;  %v104_v9 = vand.u32 127, %v103_v8  ;;  %v106_v10 = vshrl.u32 %v103_v8, 7  ;;  %v205_v19 = vld [vmem:[#allocation8] sm:$0x3]  ;;  %v336_v20 = vld [vmem:[#allocation7] ss:$0 sm:$0xff] }
  0x5e   :  { %86 = vadd.xlane.f32.xlu0 %v85_v3  ;;  %352 = vmatprep.mubr.msk.f32.mxu1 %vm519_vm0, %v518_v7  ;;  %vm213_vm5 = vcmask 15360   ;;  %v338_v40 = vld [vmem:[#allocation10] ss:$0 sm:$0xff]  ;;  %s520_s4 = smov [#allocation11]  }
  0x5f   :  { %v107_v12 = vsub.s32 %v104_v9, %v106_v10  ;;  %351 = vmatpush3.msk.msra.mxu1 %vm217_vm3, %v205_v19  ;;  %v297_v47 = vsub.s32 0, %v106_v10  ;;  %v304_v50 = vsub.s32 1, %v106_v10  ;;  %s322_s28 = sshll.u32 %s520_s4, 4  ;;  %s323_s28 = int_to_ptr.vmem [resolvable:$true] %s322_s28 }
  0x60   :  { %s481_s29 = scalar_lea.vmem %s323_s28, 512  ;;  %p486_p13 = scmp.lt.s32.totalorder %s323_s28, %s323_s28 }
  0x61   :  { %p482_p12 = scmp.ne.s32.totalorder %s323_s28, %s481_s29  ;;  %p487_p0 = scmp.lt.s32.totalorder %s481_s29, %s481_s29 }
  0x62   :  { %89 = vadd.xlane.f32.xlu0 %v88_v5 }
  0x63   :  { %p488_p1 = por %p487_p0, %p486_p13 }
  0x65   :  { %p489_p2 = pnand %p488_p1, %p482_p12 }
  0xeb   :  { %v87_v11 = vpop.xlane.xlu0 %86 }
  0xec   :  { %v91_v13 = vmul.f32 0.00390625, %v87_v11 }
  0xee   :  { %v108_v16 = vrot.slane %v91_v13, %v107_v12 }
  0xef   :  { %v90_v14 = vpop.xlane.xlu0 %89 }
  0xf0   :  { %v92_v15 = vmul.f32 0.00390625, %v90_v14 }
  0xf2   :  { %v112_v17 = vrot.slane %v92_v15, %v107_v12 }
  0xf4   :  { %v114_v18 = vsel %vm113_vm1, %v112_v17, %v108_v16 }
  0xf5   :  { %348 = vmatmul.mubr.msk.f32.vlgmr.msra.gmra.mrb[0].mxu0 %vm115_vm2, %v114_v18 }
 0x1c8   :  { %v184_v21 = vpop.f32.mrb[0].mxu0 }
 0x1c9   :  { %v185_v22 = vadd.f32 %v336_v20, %v184_v21  ;;  %v349_v23 = vpop.f32.mrb[1].mxu0 }
 0x1cb   :  { %v189_v24 = vand.u32 2147483647, %v185_v22  ;;  %v188_v35 = vmax.f32 %v185_v22, 0.0 }
 0x1cd   :  { %v190_v25 = vsub.f32 0.0, %v189_v24 }
 0x1cf   :  { %v191_v26 = vmul.f32 1.442695, %v190_v25 }
 0x1d1   :  { %365 = vpow2.f32 %v191_v26 }
 0x1db   :  { %v366_v27 = vpop.eup %365 }
 0x1dc   :  { %v193_v28 = vadd.f32 1.0, %v366_v27  ;;  %v196_v29 = vmul.f32 -0.5, %v366_v27  ;;  %v199_v31 = vand.u32 2147483647, %v366_v27 }
 0x1de   :  { %367 = vlog2.f32 %v193_v28  ;;  %v197_v30 = vadd.f32 1.0, %v196_v29  ;;  %vm200_vm4 = vcmp.lt.f32.partialorder %v199_v31, 0.0004427343 }
 0x1e0   :  { %v198_v34 = vmul.f32 %v366_v27, %v197_v30 }
 0x1e8   :  { %v368_v32 = vpop.eup %367 }
 0x1e9   :  { %v195_v33 = vmul.f32 0.6931472, %v368_v32 }
 0x1eb   :  { %v201_v36 = vsel %vm200_vm4, %v198_v34, %v195_v33 }
 0x1ec   :  { %v202_v37 = vadd.f32 %v201_v36, %v188_v35 }
 0x1ee   :  { %369 = vtanh.f32 %v202_v37 }
 0x1f8   :  { %v370_v38 = vpop.eup %369 }
 0x1f9   :  { %v204_v39 = vmul.f32 %v370_v38, %v185_v22 }
 0x1fb   :  { %353 = vmatmul.mubr.msk.f32.vlgmr.msra.gmra.mrb[0].mxu1 %vm213_vm5, %v204_v39 }
 0x2ce   :  { %v287_v41 = vpop.f32.mrb[0].mxu1 }
 0x2cf   :  { %v288_v42 = vadd.f32 %v338_v40, %v287_v41  ;;  %v354_v43 = vpop.f32.mrb[1].mxu1 }
 0x2d1   :  { %v291_v44 = vadd.f32 3.0, %v288_v42 }
 0x2d3   :  { %v292_v45 = vmax.f32 %v291_v44, 0.0 }
 0x2d5   :  { %v293_v46 = vmin.f32 %v292_v45, 6.0 }
 0x2d7   :  { %v294_v48 = vmul.f32 0.16666667, %v293_v46 }
 0x2d9   :  { %v298_v49 = vrot.slane %v294_v48, %v297_v47  ;;  %v305_v51 = vrot.slane %v294_v48, %v304_v50 }
 0x2db   :  { %300 = vbcast.lane.b32.xlu1 %v298_v49, 256 }
 0x2df   :  { %307 = vbcast.lane.b32.xlu1 %v305_v51, 256 }
 0x34d   :  { %v301_v52 = vpop.permute.xlu1 %300 }
 0x34e   :  { %v309_v53 = vmul.f32 %v301_v52, %v614_v0  ;;  %v310_v54 = vmul.f32 %v301_v52, %v616_v1 }
 0x350   :  { %313 = vst [vmem:[#allocation11] sm:$0xff] %v309_v53  ;;  %314 = vst [vmem:[#allocation11 + $0x8] sm:$0xff] %v310_v54 }
 0x351   :  { %v308_v55 = vpop.permute.xlu1 %307 }
 0x352   :  { %v311_v56 = vmul.f32 %v308_v55, %v618_v2  ;;  %v312_v57 = vmul.f32 %v308_v55, %v622_v4 }
 0x354   :  { %315 = vst [vmem:[#allocation11 + $0x10] sm:$0xff] %v311_v56  ;;  %316 = vst [vmem:[#allocation11 + $0x18] sm:$0xff] %v312_v57 }
 0x355   :  { %492 = shalt.err (!%p489_p2)
}
 0x356   :  { %s493_s7 = scalar_lea.hbm %s650_s5, 512 }
 0x357   :  { %p494_p3 = scmp.ne.s32.totalorder %s650_s5, %s493_s7  ;;  %p497_p4 = scmp.lt.u32.totalorder %s493_s7, %s650_s5 }
 0x359   :  { %p499_p5 = pnand %p497_p4, %p494_p3 }
 0x35b   :  { %502 = shalt.err (!%p499_p5)
}
 0x35c   :  { %328 = dma.vmem_to_hbm [thread:$0]  %s323_s28, 512, %s650_s5, [#allocation4], %s514_s3, %s514_s3, %s515_s21  }
 0x35d   :  { %509 = dma.done.wait [#allocation4], 512  }
 0x35e   :  { %510 = vsyncadd [#allocation4], 4294966784 }
 0x35f   :  { %332 = vsyncpa [#allocation3], 1 }
 0x360   :  { %333 = vsyncpa [#allocation6], 1 }
 0x361   :  { %334 = vsyncpa [#allocation9], 1 }
 0x362   :  { %335 = vsyncpa [#allocation4], 1 }

</bundles_post_ra>
